<compile_context>
chip_gen: v7x
topology: tpu7x:2x2x1
jax: 0.10.0
libtpu: 0.0.40
codegen_flags: <defaults>
</compile_context>

<pallas_src>
import jax
import jax.numpy as jnp
from jax import lax
from jax.experimental import pallas as pl
from jax.experimental.pallas import tpu as pltpu


def _round_up(x, m):
    return (x + m - 1) // m * m


def _mlp_kernel(tok_ref, w1c_ref, b1_ref, w2_ref, b2_ref, o_ref):
    """Fused (embedding∘fc1) + tanh + fc2 for one batch tile.

    tok_ref : (TB, SEQ)         int32  pre-shifted token ids (tok[:,s] + s*VPAD_IN)
    w1c_ref : (KPAD, HPAD)      bf16   emb-folded fc1 weight, positions concatenated
    b1_ref  : (1, HPAD)         f32
    w2_ref  : (HPAD, VPAD_OUT)  bf16
    b2_ref  : (1, VPAD_OUT)     f32
    o_ref   : (TB, VPAD_OUT)    f32    padded logits (lane-dense store)
    """
    tb, seq = tok_ref.shape
    kpad = w1c_ref.shape[0]

    tok = tok_ref[...]                                        # (TB, SEQ)
    lane = lax.broadcasted_iota(jnp.int32, (tb, kpad), 1)     # (TB, KPAD), hoisted

    # Combined one-hot over all positions; shifted id ranges never overlap so
    # the sum stays exactly 0/1.
    onehot = (lane == tok[:, 0:1]).astype(jnp.float32)
    for s in range(1, seq):                                   # seq == 3, unrolled
        onehot += (lane == tok[:, s:s + 1]).astype(jnp.float32)

    # fc1 with the embedding folded in: single K=128 MXU matmul, f32 accumulation.
    h_pre = jnp.dot(onehot.astype(jnp.bfloat16), w1c_ref[...],
                    preferred_element_type=jnp.float32)       # (TB, HPAD)
    h = jnp.tanh(h_pre + b1_ref[...])                         # bias + tanh in f32

    # fc2
    y = jnp.dot(h.astype(jnp.bfloat16), w2_ref[...],
                preferred_element_type=jnp.float32)           # (TB, VPAD_OUT)
    o_ref[...] = y + b2_ref[...]


def prepare_params(emb_table, w1, b1, w2, b2):
    """One-time re-layout: fold embedding into fc1, pad, cast weights to bf16.

    emb_table: (V, E); w1: (SEQ*E, H) stored (in, out); b1: (H,); w2: (H, V); b2: (V,)
    Returns (w1c, b1_p, w2_p, b2_p, vpad_in).
    """
    V, E = emb_table.shape
    in_feat, H = w1.shape
    assert in_feat % E == 0
    seq = in_feat // E
    vpad_in = _round_up(V, 8)                 # per-position row block   27 -> 32
    kpad = _round_up(seq * vpad_in, 128)      # combined contraction dim 96 -> 128
    hpad = _round_up(H, 128)                  # hidden                  200 -> 256
    vpad_out = _round_up(V, 128)              # lane-dense output        27 -> 128

    # Fold: w1_fold[s] = emb @ w1[s]  (computed in f32, cast to bf16 once).
    w1_r = w1.astype(jnp.float32).reshape(seq, E, H)
    fold = jnp.einsum('ve,seh->svh', emb_table.astype(jnp.float32), w1_r)  # (seq,V,H)
    w1c = jnp.zeros((kpad, hpad), jnp.float32)
    for s in range(seq):
        w1c = w1c.at[s * vpad_in:s * vpad_in + V, :H].set(fold[s])
    w1c = w1c.astype(jnp.bfloat16)

    b1_p = jnp.zeros((1, hpad), jnp.float32).at[0, :H].set(b1.astype(jnp.float32))
    w2_p = jnp.zeros((hpad, vpad_out), jnp.bfloat16).at[:H, :V].set(
        w2.astype(jnp.bfloat16))
    b2_p = jnp.zeros((1, vpad_out), jnp.float32).at[0, :V].set(b2.astype(jnp.float32))
    return w1c, b1_p, w2_p, b2_p, vpad_in


def mlp_forward(tokens, w1c, b1_p, w2_p, b2_p, vpad_in, vocab_size, *, tile_b=None):
    """tokens: (B, SEQ) int32 -> logits (B, vocab_size) float32."""
    B, seq = tokens.shape
    kpad, hpad = w1c.shape
    vpad_out = w2_p.shape[1]

    if tile_b is None:
        # Whole batch in a single grid step for small B (single-TC v5e/v6e
        # sweet spot); cap at 256 rows/step to fill the v6e/v7x MXU M dim.
        # On v7x with large B, pick tile_b = round_up(b_pad // 2, 256) so the
        # "parallel" grid axis feeds both TensorCores.
        tile_b = min(256, _round_up(B, 8))
    assert tile_b % 8 == 0
    b_pad = _round_up(B, tile_b)

    # Pre-shift token ids so the kernel builds the combined one-hot with plain
    # compares against a single 128-lane iota.
    shift = (jnp.arange(seq, dtype=jnp.int32) * vpad_in)[None, :]
    tok_shift = tokens.astype(jnp.int32) + shift
    if b_pad != B:
        tok_shift = jnp.zeros((b_pad, seq), jnp.int32).at[:B, :].set(tok_shift)

    out_padded = pl.pallas_call(
        _mlp_kernel,
        out_shape=jax.ShapeDtypeStruct((b_pad, vpad_out), jnp.float32),
        grid=(b_pad // tile_b,),
        in_specs=[
            pl.BlockSpec((tile_b, seq), lambda i: (i, 0)),      # tokens: tiled over B
            pl.BlockSpec((kpad, hpad), lambda i: (0, 0)),       # folded fc1: resident
            pl.BlockSpec((1, hpad), lambda i: (0, 0)),          # b1
            pl.BlockSpec((hpad, vpad_out), lambda i: (0, 0)),   # fc2: resident
            pl.BlockSpec((1, vpad_out), lambda i: (0, 0)),      # b2
        ],
        out_specs=pl.BlockSpec((tile_b, vpad_out), lambda i: (i, 0)),
        compiler_params=pltpu.CompilerParams(
            dimension_semantics=("parallel",)),                 # shards B-tiles on v7x
    )(tok_shift, w1c, b1_p, w2_p, b2_p)

    return out_padded[:B, :vocab_size]


def init_params(key, vocab_size, emb_size, seq_len):
    """Deterministic f32 parameter init matching the PyTorch module's shapes."""
    in_feat = seq_len * emb_size
    assert in_feat == 30, "fc1 expects in_features=30 -> seq_len*emb_size must be 30"
    hidden = 200
    k0, k1, k2, k3, k4 = jax.random.split(key, 5)
    emb_table = jax.random.normal(k0, (vocab_size, emb_size), jnp.float32)
    lim1 = 1.0 / jnp.sqrt(in_feat)
    w1 = jax.random.uniform(k1, (in_feat, hidden), jnp.float32, -lim1, lim1)
    b1 = jax.random.uniform(k2, (hidden,), jnp.float32, -lim1, lim1)
    lim2 = 1.0 / jnp.sqrt(hidden)
    w2 = jax.random.uniform(k3, (hidden, vocab_size), jnp.float32, -lim2, lim2)
    b2 = jax.random.uniform(k4, (vocab_size,), jnp.float32, -lim2, lim2)
    return emb_table, w1, b1, w2, b2


if __name__ == "__main__":
    vocab_size = 27
    emb_size = 10
    seq_len = 3           # 3 * 10 = 30 = fc1.in_features
    batch = 16            # fits one grid step (default tile_b) on every chip

    key = jax.random.PRNGKey(0)
    pkey, xkey = jax.random.split(key)
    emb_table, w1, b1, w2, b2 = init_params(pkey, vocab_size, emb_size, seq_len)
    tokens = jax.random.randint(xkey, (batch, seq_len), 0, vocab_size, jnp.int32)

    w1c, b1_p, w2_p, b2_p, vpad_in = prepare_params(emb_table, w1, b1, w2, b2)
    fwd = jax.jit(mlp_forward, static_argnames=("vpad_in", "vocab_size", "tile_b"))
    logits = fwd(tokens, w1c, b1_p, w2_p, b2_p,
                 vpad_in=vpad_in, vocab_size=vocab_size)
    jax.block_until_ready(logits)
    assert logits.shape == (batch, vocab_size)

    # Reference 1 (tight): mirrors kernel math with the prepared bf16 params
    # (gather folded rows, sum, bias+tanh in f32, bf16 fc2 with f32 acc).
    shift = jnp.arange(seq_len, dtype=jnp.int32) * vpad_in
    ids = tokens + shift[None, :]
    w1c_f = w1c.astype(jnp.float32)
    hp = jnp.take(w1c_f, ids.reshape(-1), axis=0).reshape(
        batch, seq_len, -1).sum(axis=1)
    h = jnp.tanh(hp + b1_p[0])
    ref_bf = (h.astype(jnp.bfloat16).astype(jnp.float32)
              @ w2_p.astype(jnp.float32) + b2_p[0])[:, :vocab_size]
    assert jnp.allclose(logits, ref_bf, atol=3e-3, rtol=3e-3), \
        float(jnp.max(jnp.abs(logits - ref_bf)))

    # Reference 2 (loose): pure f32 module semantics with the original weights;
    # bf16 matmul operands require a looser tolerance.
    x32 = jnp.take(emb_table, tokens, axis=0).reshape(batch, seq_len * emb_size)
    ref_f32 = jnp.tanh(x32 @ w1 + b1) @ w2 + b2
    assert jnp.allclose(logits, ref_f32, atol=5e-2, rtol=5e-2), \
        float(jnp.max(jnp.abs(logits - ref_f32)))

    print("KERNEL_OK")
</pallas_src>

<mosaic_0001>
module attributes {stable_mosaic.version = 11 : i64} {
  func.func @_mlp_kernel(%arg0: i32, %arg1: memref<16x3xi32, #tpu.memory_space<vmem>>, %arg2: memref<128x256xbf16, #tpu.memory_space<vmem>>, %arg3: memref<1x256xf32, #tpu.memory_space<vmem>>, %arg4: memref<256x128xbf16, #tpu.memory_space<vmem>>, %arg5: memref<1x128xf32, #tpu.memory_space<vmem>>, %arg6: memref<16x128xf32, #tpu.memory_space<vmem>>) attributes {dimension_semantics = [#tpu.dimension_semantics<parallel>], iteration_bounds = array<i64: 1>, scalar_prefetch = 0 : i64, scratch_operands = 0 : i64, tpu.core_type = #tpu.core_type<tc>, window_params = [{transform_indices = @transform_0, window_bounds = array<i64: 16, 3>}, {pipeline_mode = #tpu.pipeline_mode<synchronous>, transform_indices = @transform_1, window_bounds = array<i64: 128, 256>}, {pipeline_mode = #tpu.pipeline_mode<synchronous>, transform_indices = @transform_2, window_bounds = array<i64: 1, 256>}, {pipeline_mode = #tpu.pipeline_mode<synchronous>, transform_indices = @transform_3, window_bounds = array<i64: 256, 128>}, {pipeline_mode = #tpu.pipeline_mode<synchronous>, transform_indices = @transform_4, window_bounds = array<i64: 1, 128>}, {transform_indices = @transform_5, window_bounds = array<i64: 16, 128>}]} {
    %c0 = arith.constant 0 : index
    %c0_0 = arith.constant 0 : index
    %0 = vector.load %arg1[%c0, %c0_0] : memref<16x3xi32, #tpu.memory_space<vmem>>, vector<16x3xi32>
    %1 = tpu.iota {dimensions = array<i32: 1>} : vector<16x128xi32>
    %2 = vector.extract_strided_slice %0 {offsets = [0, 0], sizes = [16, 1], strides = [1, 1]} : vector<16x3xi32> to vector<16x1xi32>
    %3 = vector.broadcast %2 : vector<16x1xi32> to vector<16x128xi32>
    %4 = arith.cmpi eq, %1, %3 : vector<16x128xi32>
    %5 = arith.extui %4 : vector<16x128xi1> to vector<16x128xi32>
    %6 = arith.sitofp %5 : vector<16x128xi32> to vector<16x128xf32>
    %7 = vector.extract_strided_slice %0 {offsets = [0, 1], sizes = [16, 1], strides = [1, 1]} : vector<16x3xi32> to vector<16x1xi32>
    %8 = vector.broadcast %7 : vector<16x1xi32> to vector<16x128xi32>
    %9 = arith.cmpi eq, %1, %8 : vector<16x128xi32>
    %10 = arith.extui %9 : vector<16x128xi1> to vector<16x128xi32>
    %11 = arith.sitofp %10 : vector<16x128xi32> to vector<16x128xf32>
    %12 = arith.addf %6, %11 : vector<16x128xf32>
    %13 = vector.extract_strided_slice %0 {offsets = [0, 2], sizes = [16, 1], strides = [1, 1]} : vector<16x3xi32> to vector<16x1xi32>
    %14 = vector.broadcast %13 : vector<16x1xi32> to vector<16x128xi32>
    %15 = arith.cmpi eq, %1, %14 : vector<16x128xi32>
    %16 = arith.extui %15 : vector<16x128xi1> to vector<16x128xi32>
    %17 = arith.sitofp %16 : vector<16x128xi32> to vector<16x128xf32>
    %18 = arith.addf %12, %17 : vector<16x128xf32>
    %19 = arith.truncf %18 : vector<16x128xf32> to vector<16x128xbf16>
    %c0_1 = arith.constant 0 : index
    %c0_2 = arith.constant 0 : index
    %20 = vector.load %arg2[%c0_1, %c0_2] : memref<128x256xbf16, #tpu.memory_space<vmem>>, vector<128x256xbf16>
    %cst = arith.constant dense<0.000000e+00> : vector<16x256xf32>
    %21 = tpu.matmul %19, %20, %cst {dimension_numbers = #tpu.dot_dimension_numbers<[1], [0], [0], [1], [0, 0, 1, 1], [], []>} : vector<16x128xbf16>, vector<128x256xbf16>, vector<16x256xf32> -> vector<16x256xf32>
    %c0_3 = arith.constant 0 : index
    %c0_4 = arith.constant 0 : index
    %22 = vector.load %arg3[%c0_3, %c0_4] : memref<1x256xf32, #tpu.memory_space<vmem>>, vector<1x256xf32>
    %23 = vector.broadcast %22 : vector<1x256xf32> to vector<16x256xf32>
    %24 = arith.addf %21, %23 : vector<16x256xf32>
    %25 = math.tanh %24 : vector<16x256xf32>
    %26 = arith.truncf %25 : vector<16x256xf32> to vector<16x256xbf16>
    %c0_5 = arith.constant 0 : index
    %c0_6 = arith.constant 0 : index
    %27 = vector.load %arg4[%c0_5, %c0_6] : memref<256x128xbf16, #tpu.memory_space<vmem>>, vector<256x128xbf16>
    %cst_7 = arith.constant dense<0.000000e+00> : vector<16x128xf32>
    %28 = tpu.matmul %26, %27, %cst_7 {dimension_numbers = #tpu.dot_dimension_numbers<[1], [0], [0], [1], [0, 0, 1, 1], [], []>} : vector<16x256xbf16>, vector<256x128xbf16>, vector<16x128xf32> -> vector<16x128xf32>
    %c0_8 = arith.constant 0 : index
    %c0_9 = arith.constant 0 : index
    %29 = vector.load %arg5[%c0_8, %c0_9] : memref<1x128xf32, #tpu.memory_space<vmem>>, vector<1x128xf32>
    %30 = vector.broadcast %29 : vector<1x128xf32> to vector<16x128xf32>
    %31 = arith.addf %28, %30 : vector<16x128xf32>
    %c0_10 = arith.constant 0 : index
    %c0_11 = arith.constant 0 : index
    %32 = vector.load %arg6[%c0_10, %c0_11] : memref<16x128xf32, #tpu.memory_space<vmem>>, vector<16x128xf32>
    tpu.vector_store %arg6[%c0_10, %c0_11], %31 {strides = array<i32>} : memref<16x128xf32, #tpu.memory_space<vmem>>, vector<16x128xf32>,
    return
  }
  func.func @transform_0(%arg0: i32) -> (i32, i32) {
    %c0_i32 = arith.constant 0 : i32
    %c0_i32_0 = arith.constant 0 : i32
    return %arg0, %c0_i32 : i32, i32
  }
  func.func @transform_1(%arg0: i32) -> (i32, i32) {
    %c0_i32 = arith.constant 0 : i32
    %c0_i32_0 = arith.constant 0 : i32
    %c0_i32_1 = arith.constant 0 : i32
    return %c0_i32, %c0_i32_0 : i32, i32
  }
  func.func @transform_2(%arg0: i32) -> (i32, i32) {
    %c0_i32 = arith.constant 0 : i32
    %c0_i32_0 = arith.constant 0 : i32
    %c0_i32_1 = arith.constant 0 : i32
    return %c0_i32, %c0_i32_0 : i32, i32
  }
  func.func @transform_3(%arg0: i32) -> (i32, i32) {
    %c0_i32 = arith.constant 0 : i32
    %c0_i32_0 = arith.constant 0 : i32
    %c0_i32_1 = arith.constant 0 : i32
    return %c0_i32, %c0_i32_0 : i32, i32
  }
  func.func @transform_4(%arg0: i32) -> (i32, i32) {
    %c0_i32 = arith.constant 0 : i32
    %c0_i32_0 = arith.constant 0 : i32
    %c0_i32_1 = arith.constant 0 : i32
    return %c0_i32, %c0_i32_0 : i32, i32
  }
  func.func @transform_5(%arg0: i32) -> (i32, i32) {
    %c0_i32 = arith.constant 0 : i32
    %c0_i32_0 = arith.constant 0 : i32
    return %arg0, %c0_i32 : i32, i32
  }
}

</mosaic_0001>

<bundles_post_ra>
// kernel: mlp_forward.1
= control target key start
LH: loop header
LB: loop body
LE: loop exit
PB: predicated region body
PF: predicated region fallthrough
CT: control target
= control target key end

     0   :  { %10 = vsyncpa [#allocation3], 0  ;;  %s739_s0 = inlined_call_operand.vmem [shape: s32[16,3], index: 0, kind: input, shape index: {}]   ;;  %s740_s1 = inlined_call_operand.hbm [shape: bf16[128,256], index: 1, kind: input, shape index: {}]   ;;  %s741_s2 = inlined_call_operand.vmem [shape: f32[1,256], index: 2, kind: input, shape index: {}]   ;;  %s742_s3 = inlined_call_operand.hbm [shape: bf16[256,128], index: 3, kind: input, shape index: {}]   ;;  %s743_s4 = inlined_call_operand.vmem [shape: f32[1,128], index: 4, kind: input, shape index: {}]   ;;  %s744_s5 = inlined_call_operand.hbm [shape: f32[16,128], index: 5, kind: output, shape index: {}]  }
   0x1   :  { %11 = vsyncpa [#allocation6], 0 }
   0x2   :  { %12 = vsyncpa [#allocation4], 0  ;;  %s644_s18 = smov [#allocation2]   ;;  %s572_s22 = scalar_lea.hbm %s740_s1, 2048 }
   0x3   :  { %s20_s19 = sshll.u32 %s644_s18, 4  ;;  %p573_p0 = scmp.ne.s32.totalorder %s740_s1, %s572_s22  ;;  %s21_s19 = int_to_ptr.vmem [resolvable:$true] %s20_s19 }
   0x4   :  { %p576_p1 = scmp.lt.u32.totalorder %s572_s22, %s740_s1 }
   0x6   :  { %p578_p2 = pnand %p576_p1, %p573_p0 }
   0x8   :  { %581 = shalt.err (!%p578_p2)
}
   0x9   :  { %s582_s27 = scalar_lea.vmem %s21_s19, 2048  ;;  %p587_p4 = scmp.lt.s32.totalorder %s21_s19, %s21_s19 }
   0xa   :  { %p583_p3 = scmp.ne.s32.totalorder %s21_s19, %s582_s27  ;;  %p588_p5 = scmp.lt.s32.totalorder %s582_s27, %s582_s27 }
   0xc   :  { %p589_p6 = por %p588_p5, %p587_p4 }
   0xe   :  { %p590_p7 = pnand %p589_p6, %p583_p3 }
  0x10   :  { %593 = shalt.err (!%p590_p7)
}
  0x11   :  { %s645_s28 = smov 128   ;;  %s646_s29 = smov 8  }
  0x12   :  { %26 = dma.hbm_to_vmem [thread:$0]  %s740_s1, 2048, %s21_s19, [#allocation3], %s645_s28, %s645_s28, %s646_s29  }
  0x13   :  { %s647_s7 = smov [#allocation5]   ;;  %s594_s11 = scalar_lea.hbm %s742_s3, 2048 }
  0x14   :  { %s34_s8 = sshll.u32 %s647_s7, 4  ;;  %p595_p8 = scmp.ne.s32.totalorder %s742_s3, %s594_s11  ;;  %s35_s8 = int_to_ptr.vmem [resolvable:$true] %s34_s8 }
  0x15   :  { %p598_p9 = scmp.lt.u32.totalorder %s594_s11, %s742_s3 }
  0x17   :  { %p600_p10 = pnand %p598_p9, %p595_p8 }
  0x19   :  { %603 = shalt.err (!%p600_p10)
}
  0x1a   :  { %s604_s16 = scalar_lea.vmem %s35_s8, 2048  ;;  %p609_p12 = scmp.lt.s32.totalorder %s35_s8, %s35_s8 }
  0x1b   :  { %p605_p11 = scmp.ne.s32.totalorder %s35_s8, %s604_s16  ;;  %p610_p13 = scmp.lt.s32.totalorder %s604_s16, %s604_s16 }
  0x1d   :  { %p611_p0 = por %p610_p13, %p609_p12 }
  0x1f   :  { %p612_p1 = pnand %p611_p0, %p605_p11 }
  0x21   :  { %615 = shalt.err (!%p612_p1)
}
  0x22   :  { %s648_s1 = smov 64   ;;  %s649_s17 = smov 4  }
  0x23   :  { %40 = dma.hbm_to_vmem [thread:$0]  %s742_s3, 2048, %s35_s8, [#allocation6], %s648_s1, %s648_s1, %s649_s17  }
  0x24   :  { %638 = dma.done.wait [#allocation3], 2048  }
  0x25   :  { %639 = vsyncadd [#allocation3], 4294965248 }
  0x26   :  { %640 = dma.done.wait [#allocation6], 2048  }
  0x27   :  { %641 = vsyncadd [#allocation6], 4294965248  ;;  %v650_v0 = vmov 1   ;;  %v651_v1 = vmov 0   ;;  %v50_v2 = vld [vmem:[%s739_s0] sm:$0xff]  ;;  %v51_v3 = vld [vmem:[%s739_s0 + $0x8] sm:$0xff]  ;;  %v52_v27 = vlaneseq }
  0x28   :  { %521 = vset.pattern.permute.xlu1 %v650_v0  ;;  %520 = vset.pattern.permute.xlu0 %v651_v1  ;;  %v524_v4 = vld [vmem:[#allocation2 + $0x4] ss:$8 sps:$4 sm:$0xff]   ;;  %v526_v5 = vld [vmem:[#allocation2] ss:$8 sps:$4 sm:$0xff]   ;;  %v527_v6 = vld [vmem:[#allocation2 + $0x14] ss:$8 sps:$4 sm:$0xff]  }
  0x29   :  { %235 = vmatprep.mubr.bf16.mxu0 %v651_v1  ;;  %67 = vperm.xlu1 %521, %v50_v2   ;;  %v529_v7 = vld [vmem:[#allocation2 + $0x10] ss:$8 sps:$4 sm:$0xff]   ;;  %v530_v8 = vld [vmem:[#allocation2 + $0x24] ss:$8 sps:$4 sm:$0xff]   ;;  %v532_v9 = vld [vmem:[#allocation2 + $0x20] ss:$8 sps:$4 sm:$0xff]  }
  0x2a   :  { %55 = vperm.xlu0 %520, %v50_v2   ;;  %203 = vmatprep.subr.bf16.mxu0 %v524_v4  ;;  %v652_v10 = vmov 2   ;;  %v533_v11 = vld [vmem:[#allocation2 + $0x34] ss:$8 sps:$4 sm:$0xff]   ;;  %v535_v12 = vld [vmem:[#allocation2 + $0x30] ss:$8 sps:$4 sm:$0xff]   ;;  %v548_v15 = vld [vmem:[#allocation5 + $0x40] sm:$0xff]  }
  0x2b   :  { %204 = vmatpush1.bf16.msra.mxu0 %v526_v5  ;;  %v536_v13 = vld [vmem:[#allocation2 + $0x44] ss:$8 sps:$4 sm:$0xff]   ;;  %v538_v14 = vld [vmem:[#allocation2 + $0x40] ss:$8 sps:$4 sm:$0xff]   ;;  %v539_v18 = vld [vmem:[#allocation2 + $0x54] ss:$8 sps:$4 sm:$0xff]   ;;  %487 = vmatprep.subr.bf16.mxu1 %v548_v15 }
  0x2c   :  { %205 = vmatprep.subr.bf16.mxu0 %v527_v6  ;;  %v549_v16 = vld [vmem:[#allocation5] sm:$0xff]   ;;  %v550_v17 = vld [vmem:[#allocation5 + $0x48] sm:$0xff]   ;;  %v541_v19 = vld [vmem:[#allocation2 + $0x50] ss:$8 sps:$4 sm:$0xff]   ;;  %v53_v28 = vand.u32 127, %v52_v27  ;;  %v653_v33 = vmov 0.0  }
  0x2d   :  { %70 = vperm.xlu1 %521, %v51_v3   ;;  %v551_v20 = vld [vmem:[#allocation5 + $0x8] sm:$0xff]   ;;  %v552_v21 = vld [vmem:[#allocation5 + $0x50] sm:$0xff]   ;;  %488 = vmatpush3.bf16.msra.mxu1 %v549_v16  ;;  %v554_v47 = vld [vmem:[#allocation5 + $0x58] sm:$0xff]   ;;  %v114_v57 = vshrl.u32 %v52_v27, 7  ;;  %s654_s25 = smov [#allocation7]  }
  0x2e   :  { %58 = vperm.xlu0 %520, %v51_v3   ;;  %v542_v22 = vld [vmem:[#allocation2 + $0x64] ss:$8 sps:$4 sm:$0xff]   ;;  %489 = vmatprep.subr.bf16.mxu1 %v550_v17  ;;  %v553_v23 = vld [vmem:[#allocation5 + $0x10] sm:$0xff]   ;;  %v544_v24 = vld [vmem:[#allocation2 + $0x60] ss:$8 sps:$4 sm:$0xff]   ;;  %s435_s26 = sshll.u32 %s654_s25, 4  ;;  %s436_s26 = int_to_ptr.vmem [resolvable:$true] %s435_s26 }
  0x2f   :  { %206 = vmatpush1.bf16.msra.mxu0 %v529_v7  ;;  %v545_v25 = vld [vmem:[#allocation2 + $0x74] ss:$8 sps:$4 sm:$0xff]   ;;  %v547_v26 = vld [vmem:[#allocation2 + $0x70] ss:$8 sps:$4 sm:$0xff]   ;;  %v556_v49 = vld [vmem:[#allocation5 + $0x60] sm:$0xff]   ;;  %v115_v58 = vsub.s32 0, %v114_v57  ;;  %p621_p3 = scmp.lt.s32.totalorder %s436_s26, %s436_s26 }
  0x30   :  { %207 = vmatprep.subr.bf16.mxu0 %v530_v8  ;;  %v555_v48 = vld [vmem:[#allocation5 + $0x18] sm:$0xff]   ;;  %v557_v50 = vld [vmem:[#allocation5 + $0x20] sm:$0xff]   ;;  %v558_v51 = vld [vmem:[#allocation5 + $0x68] sm:$0xff]   ;;  %v119_v60 = vsub.s32 1, %v114_v57  ;;  %s616_s27 = scalar_lea.vmem %s436_s26, 256 }
  0x31   :  { %523 = vset.pattern.permute.xlu1 %v652_v10  ;;  %490 = vmatpush3.bf16.msra.mxu1 %v551_v20  ;;  %v559_v52 = vld [vmem:[#allocation5 + $0x28] sm:$0xff]   ;;  %v560_v53 = vld [vmem:[#allocation5 + $0x70] sm:$0xff]   ;;  %v562_v55 = vld [vmem:[#allocation5 + $0x78] sm:$0xff]   ;;  %p617_p2 = scmp.ne.s32.totalorder %s436_s26, %s616_s27  ;;  %p622_p4 = scmp.lt.s32.totalorder %s616_s27, %s616_s27 }
  0x32   :  { %522 = vset.pattern.permute.xlu0 %v652_v10  ;;  %84 = vperm.xlu1 %523, %v51_v3   ;;  %v561_v54 = vld [vmem:[#allocation5 + $0x30] sm:$0xff]   ;;  %v563_v56 = vld [vmem:[#allocation5 + $0x38] sm:$0xff]   ;;  %v111_v59 = vld [vmem:[%s741_s2] sm:$0x3] }
  0x33   :  { %81 = vperm.xlu0 %522, %v50_v2   ;;  %208 = vmatpush1.bf16.msra.mxu0 %v532_v9  ;;  %v116_v61 = vrot.slane %v111_v59, %v115_v58  ;;  %v120_v62 = vrot.slane %v111_v59, %v119_v60  ;;  %p623_p5 = por %p622_p4, %p621_p3 }
  0x34   :  { %209 = vmatprep.subr.bf16.mxu0 %v533_v11  ;;  %491 = vmatprep.subr.bf16.mxu1 %v552_v21 }
  0x35   :  { %492 = vmatpush3.bf16.msra.mxu1 %v553_v23  ;;  %p624_p6 = pnand %p623_p5, %p617_p2 }
  0x36   :  { %493 = vmatprep.subr.bf16.mxu1 %v554_v47 }
  0x37   :  { %210 = vmatpush1.bf16.msra.mxu0 %v535_v12 }
  0x38   :  { %211 = vmatprep.subr.bf16.mxu0 %v536_v13 }
  0x39   :  { %494 = vmatpush3.bf16.msra.mxu1 %v555_v48 }
  0x3a   :  { %495 = vmatprep.subr.bf16.mxu1 %v556_v49 }
  0x3b   :  { %212 = vmatpush1.bf16.msra.mxu0 %v538_v14  ;;  %v470_v14 = vld [vmem:[%s743_s4] ss:$0 sm:$0xff] }
  0x3c   :  { %213 = vmatprep.subr.bf16.mxu0 %v539_v18 }
  0x3d   :  { %496 = vmatpush3.bf16.msra.mxu1 %v557_v50 }
  0x3e   :  { %497 = vmatprep.subr.bf16.mxu1 %v558_v51 }
  0x3f   :  { %214 = vmatpush1.bf16.msra.mxu0 %v541_v19 }
  0x40   :  { %215 = vmatprep.subr.bf16.mxu0 %v542_v22 }
  0x41   :  { %498 = vmatpush3.bf16.msra.mxu1 %v559_v52 }
  0x42   :  { %499 = vmatprep.subr.bf16.mxu1 %v560_v53 }
  0x43   :  { %216 = vmatpush1.bf16.msra.mxu0 %v544_v24 }
  0x44   :  { %217 = vmatprep.subr.bf16.mxu0 %v545_v25 }
  0x45   :  { %500 = vmatpush3.bf16.msra.mxu1 %v561_v54 }
  0x46   :  { %501 = vmatprep.subr.bf16.mxu1 %v562_v55 }
  0x47   :  { %218 = vmatpush1.bf16.msra.mxu0 %v547_v26 }
  0x49   :  { %502 = vmatpush3.bf16.msra.mxu1 %v563_v56 }
  0xa8   :  { %v68_v29 = vpop.permute.xlu1 %67 }
  0xa9   :  { %v56_v30 = vpop.permute.xlu0 %55  ;;  %vm72_vm0 = vcmp.eq.s32.totalorder %v53_v28, %v68_v29 }
  0xaa   :  { %vm60_vm1 = vcmp.eq.s32.totalorder %v53_v28, %v56_v30  ;;  %v450_v34 = vsel %vm72_vm0, 1.0, %v653_v33 }
  0xab   :  { %v448_v35 = vsel %vm60_vm1, 1.0, %v653_v33 }
  0xac   :  { %v71_v31 = vpop.permute.xlu1 %70  ;;  %v78_v40 = vadd.f32 %v450_v34, %v448_v35 }
  0xad   :  { %v59_v32 = vpop.permute.xlu0 %58  ;;  %vm73_vm2 = vcmp.eq.s32.totalorder %v53_v28, %v71_v31 }
  0xae   :  { %vm61_vm3 = vcmp.eq.s32.totalorder %v53_v28, %v59_v32  ;;  %v451_v36 = vsel %vm73_vm2, 1.0, %v653_v33 }
  0xaf   :  { %v449_v37 = vsel %vm61_vm3, 1.0, %v653_v33 }
  0xb0   :  { %v79_v41 = vadd.f32 %v451_v36, %v449_v37 }
  0xb1   :  { %v85_v38 = vpop.permute.xlu1 %84 }
  0xb2   :  { %v82_v39 = vpop.permute.xlu0 %81  ;;  %vm87_vm4 = vcmp.eq.s32.totalorder %v53_v28, %v85_v38 }
  0xb3   :  { %vm86_vm5 = vcmp.eq.s32.totalorder %v53_v28, %v82_v39  ;;  %v453_v42 = vsel %vm87_vm4, 1.0, %v653_v33 }
  0xb4   :  { %v452_v43 = vsel %vm86_vm5, 1.0, %v653_v33  ;;  %v93_v44 = vadd.f32 %v453_v42, %v79_v41 }
  0xb5   :  { %v92_v45 = vadd.f32 %v452_v43, %v78_v40 }
  0xb7   :  { %v94_v46 = vpack.c.bf16 %v93_v44, %v92_v45 }
  0xb9   :  { %236 = vmatmul.mubr.bf16.vlgmr.msra.gmra.mrb[0].mxu0 %v94_v46 }
 0x18c   :  { %v237_v63 = vpop.f32.mrb[0].mxu0 }
 0x18d   :  { %v238_v0 = vadd.f32 %v237_v63, %v116_v61  ;;  %v239_v1 = vpop.f32.mrb[1].mxu0 }
 0x18e   :  { %v240_v2 = vadd.f32 %v239_v1, %v120_v62  ;;  %v241_v3 = vpop.f32.mrb[2].mxu0 }
 0x18f   :  { %564 = vtanh.f32 %v238_v0  ;;  %v242_v4 = vadd.f32 %v241_v3, %v116_v61  ;;  %v243_v5 = vpop.f32.mrb[3].mxu0 }
 0x190   :  { %566 = vtanh.f32 %v240_v2  ;;  %v244_v6 = vadd.f32 %v243_v5, %v120_v62 }
 0x191   :  { %568 = vtanh.f32 %v242_v4 }
 0x192   :  { %570 = vtanh.f32 %v244_v6 }
 0x199   :  { %v565_v7 = vpop.eup %564 }
 0x19a   :  { %v567_v8 = vpop.eup %566 }
 0x19b   :  { %v569_v9 = vpop.eup %568 }
 0x19c   :  { %v571_v10 = vpop.eup %570  ;;  %v250_v11 = vpack.c.bf16 %v569_v9, %v565_v7 }
 0x19d   :  { %v251_v12 = vpack.c.bf16 %v571_v10, %v567_v8 }
 0x19f   :  { %419 = vmatprep.mubr.bf16.mxu1 %v251_v12 }
 0x1a0   :  { %420 = vmatmul.mubr.bf16.vlgmr.msra.gmra.mrb[0].mxu1 %v250_v11 }
 0x273   :  { %v503_v13 = vpop.f32.mrb[0].mxu1 }
 0x274   :  { %v504_v15 = vpop.f32.mrb[1].mxu1 }
 0x275   :  { %v505_v16 = vadd.f32 %v504_v15, %v503_v13  ;;  %v506_v17 = vpop.f32.mrb[2].mxu1 }
 0x276   :  { %v507_v18 = vpop.f32.mrb[3].mxu1 }
 0x277   :  { %v422_v19 = vadd.f32 %v505_v16, %v470_v14  ;;  %v508_v20 = vadd.f32 %v507_v18, %v506_v17 }
 0x279   :  { %428 = vst [vmem:[#allocation7] sm:$0xff] %v422_v19  ;;  %v425_v21 = vadd.f32 %v508_v20, %v470_v14 }
 0x27b   :  { %429 = vst [vmem:[#allocation7 + $0x8] sm:$0xff] %v425_v21 }
 0x27c   :  { %627 = shalt.err (!%p624_p6)
}
 0x27d   :  { %s628_s6 = scalar_lea.hbm %s744_s5, 256 }
 0x27e   :  { %p629_p7 = scmp.ne.s32.totalorder %s744_s5, %s628_s6  ;;  %p632_p8 = scmp.lt.u32.totalorder %s628_s6, %s744_s5 }
 0x280   :  { %p634_p9 = pnand %p632_p8, %p629_p7 }
 0x282   :  { %637 = shalt.err (!%p634_p9)
}
 0x283   :  { %441 = dma.vmem_to_hbm [thread:$0]  %s436_s26, 256, %s744_s5, [#allocation4], %s645_s28, %s645_s28, %s646_s29  }
 0x284   :  { %642 = dma.done.wait [#allocation4], 256  }
 0x285   :  { %643 = vsyncadd [#allocation4], 4294967040 }
 0x286   :  { %445 = vsyncpa [#allocation3], 1 }
 0x287   :  { %446 = vsyncpa [#allocation6], 1 }
 0x288   :  { %447 = vsyncpa [#allocation4], 1 }

</bundles_post_ra>
